<compile_context>
chip_gen: v5e
topology: v5e:2x2
jax: 0.10.0
libtpu: 0.0.40
codegen_flags: <defaults>
</compile_context>

<pallas_src>
from functools import partial

import jax
import jax.numpy as jnp
from jax.experimental import pallas as pl
from jax.experimental.pallas import tpu as pltpu

C_IN = 2
C_HID = 16
KW = 45          # kernel width == stride
_LANE = 128      # lane quantum: code-block last dim / tile alignment


def _cdiv(a, b):
    return -(-a // b)


def _ae_kernel(x_ref, we_ref, be_ref, wd_ref, bd_ref, out_ref, code_ref):
    """One (batch-element, time-block) tile.

    x_ref   : (2, tt, 45)   input windows, per channel        (io dtype)
    we_ref  : (2, 45, 16)   encoder weight, channel-major      (io dtype)
    be_ref  : (1, 16)       encoder bias                       (f32)
    wd_ref  : (2, 16, 45)   decoder weight, channel-major      (io dtype)
    bd_ref  : (2, 1, 45)    decoder bias (broadcast over k)    (f32)
    out_ref : (2, tt, 45)   reconstruction                     (io dtype)
    code_ref: (16, tt)      latent code, already channel-major (io dtype)
    """
    # Encoder: per-input-channel (tt,45)@(45,16) MXU matmuls, f32 accumulation.
    acc = jnp.dot(x_ref[0], we_ref[0], preferred_element_type=jnp.float32)
    acc = acc + jnp.dot(x_ref[1], we_ref[1], preferred_element_type=jnp.float32)
    code = jnp.maximum(acc + be_ref[...], 0.0)                       # (tt, 16) f32

    # Emit the code directly in PyTorch's (C_hid, T) layout: the XLU transpose
    # is free slack here and the HBM store becomes lane-dense (tt lanes).
    code_ref[...] = code.T.astype(code_ref.dtype)

    # Decoder: (tt,16)@(16,45) per output channel + bias + ReLU.
    code_c = code.astype(wd_ref.dtype)
    out0 = jnp.dot(code_c, wd_ref[0], preferred_element_type=jnp.float32) + bd_ref[0]
    out1 = jnp.dot(code_c, wd_ref[1], preferred_element_type=jnp.float32) + bd_ref[1]
    out_ref[0] = jnp.maximum(out0, 0.0).astype(out_ref.dtype)
    out_ref[1] = jnp.maximum(out1, 0.0).astype(out_ref.dtype)


def _vmem_budget(io_bytes):
    """Per-generation row target + VMEM accounting (lane-padded)."""
    try:
        vmem_cap = int(pltpu.get_tpu_info().vmem_capacity_bytes)
    except Exception:
        vmem_cap = 64 << 20            # conservative fallback (v7x per-core VMEM)
    vmem_cap = max(vmem_cap, 32 << 20)
    # Double-buffered, lane-padded VMEM bytes per conv-window row:
    #   x   : 2 ch * 128 lanes (45 pads to 128) * io_bytes, x2 buffers
    #   out : same
    #   code: 16 values (lane-dense (16, tile_t) block),    x2 buffers
    per_row = 2 * (2 * _LANE * io_bytes) + 2 * (2 * _LANE * io_bytes) + 2 * (16 * io_bytes)
    budget = min(48 << 20, vmem_cap // 2)          # <= ~48 MiB and <= half of VMEM
    row_target = max(512, min(8192, budget // per_row))
    return int(row_target), int(per_row), int(vmem_cap)


def _choose_tile_t(N, T, row_target):
    """Pick (tile_t, t_pad).

    Constraints / goals:
      * tile_t % 128 == 0 unless tile_t == t_pad (the code block's last dim must
        be a multiple of 128 or the full dim; keeps its store lane-dense).
      * total grid steps N * (t_pad // tile_t) >= 2 always, >= 4 when N == 1
        (>= 2 per v7x TensorCore so double-buffering actually overlaps).
      * tile_t <= row_target (lane-padded double-buffered VMEM budget).
      * padding (t_pad - T) bounded by ~128 windows per tile.
    """
    row_target = max(_LANE, (row_target // _LANE) * _LANE)
    want_ttiles = _cdiv(4, N) if N < 4 else 1

    if T <= _LANE:
        if N >= 2:
            return T, T                          # grid (N, 1): still >= 2 steps, no pad
        # N == 1, tiny T: a few lane-aligned tiles so the pipeline has steps to
        # overlap; absolute padded bytes are negligible at this size.
        return _LANE, _LANE * want_ttiles

    n_min = max(want_ttiles, _cdiv(T, row_target))
    if n_min == 1:
        return T, T                              # N >= 4 and T fits in one tile: no pad

    # Prefer a lane-aligned divisor of T (no padding, no extra HBM copies).
    best = 0
    d = _LANE
    while d <= min(T, row_target):
        if T % d == 0 and T // d >= n_min:
            best = d
        d += _LANE
    if best:
        return best, T

    # Otherwise lane-aligned tile, pad T up to n * tile_t (waste < 128 rows/tile).
    n = n_min
    tile_t = min(row_target, _cdiv(_cdiv(T, n), _LANE) * _LANE)
    while n * tile_t < T:
        n += 1
    return tile_t, n * tile_t


@partial(jax.jit, static_argnames=("io_dtype",))
def autoencoder_forward(x, w_enc, b_enc, w_dec, b_dec, *, io_dtype=jnp.float32):
    """Forward pass of `autoencoder` (gabor=False).

    x     : (N, 2, L)
    w_enc : (16, 2, 45), b_enc: (16,)   -- nn.Conv1d(2, 16, 45, stride=45)
    w_dec : (16, 2, 45), b_dec: (2,)    -- nn.ConvTranspose1d(16, 2, 45, stride=45)
    Returns (recon (N, 2, T*45), code (N, 16, T)) with T = L // 45.
    io_dtype=jnp.bfloat16 halves HBM traffic (f32 MXU accumulation kept).
    """
    N, C, L = x.shape
    assert C == C_IN
    T = L // KW
    assert T >= 1, "input shorter than one conv window"

    if T * KW != L:                      # PyTorch conv drops the tail samples
        x = x[..., : T * KW]
    x = x.astype(io_dtype)
    # Free view (no data movement): one row per non-overlapping conv window.
    x_w = x.reshape(N, C_IN, T, KW)

    io_bytes = jnp.dtype(io_dtype).itemsize
    row_target, per_row, vmem_cap = _vmem_budget(io_bytes)
    tile_t, t_pad = _choose_tile_t(N, T, row_target)
    if t_pad != T:
        x_w = jnp.pad(x_w, ((0, 0), (0, 0), (0, t_pad - T), (0, 0)))

    # Tiny weight re-layouts (~6 KiB): channel-major so the kernel does plain
    # (rows,45)@(45,16) and (rows,16)@(16,45) MXU matmuls.  Weights follow the
    # I/O dtype (bf16 x bf16 -> f32 is MXU-native); biases stay f32.
    we = jnp.transpose(w_enc, (1, 2, 0)).astype(io_dtype)            # (2, 45, 16)
    be = b_enc.reshape(1, C_HID).astype(jnp.float32)                 # (1, 16)
    wd = jnp.transpose(w_dec, (1, 0, 2)).astype(io_dtype)            # (2, 16, 45)
    bd = jnp.broadcast_to(b_dec.reshape(C_IN, 1, 1),
                          (C_IN, 1, KW)).astype(jnp.float32)         # (2, 1, 45)

    # Explicit scoped-VMEM limit from the lane-padded footprint (+ headroom for
    # resident weights / semaphores), clamped below physical capacity.
    footprint = tile_t * per_row + (2 << 20)
    vmem_limit = int(min(vmem_cap - (2 << 20), max(footprint, 16 << 20)))

    grid = (N, t_pad // tile_t)

    out_nctk, code_nct = pl.pallas_call(
        _ae_kernel,
        out_shape=(
            jax.ShapeDtypeStruct((N, C_IN, t_pad, KW), io_dtype),
            jax.ShapeDtypeStruct((N, C_HID, t_pad), io_dtype),
        ),
        grid_spec=pl.GridSpec(
            grid=grid,
            in_specs=[
                pl.BlockSpec((None, C_IN, tile_t, KW), lambda n, t: (n, 0, t, 0)),
                pl.BlockSpec((C_IN, KW, C_HID), lambda n, t: (0, 0, 0)),
                pl.BlockSpec((1, C_HID), lambda n, t: (0, 0)),
                pl.BlockSpec((C_IN, C_HID, KW), lambda n, t: (0, 0, 0)),
                pl.BlockSpec((C_IN, 1, KW), lambda n, t: (0, 0, 0)),
            ],
            out_specs=(
                pl.BlockSpec((None, C_IN, tile_t, KW), lambda n, t: (n, 0, t, 0)),
                pl.BlockSpec((None, C_HID, tile_t), lambda n, t: (n, 0, t)),
            ),
        ),
        compiler_params=pltpu.CompilerParams(
            dimension_semantics=("parallel", "parallel"),
            vmem_limit_bytes=vmem_limit),
    )(x_w, we, be, wd, bd)

    if t_pad != T:
        out_nctk = out_nctk[:, :, :T, :]
        code_nct = code_nct[:, :, :T]

    recon = out_nctk.reshape(N, C_IN, T * KW)       # free (contiguous) reshape
    return recon, code_nct


def _reference_forward(x, w_enc, b_enc, w_dec, b_dec):
    """Pure-JAX f32 reference of the same math (for correctness checks)."""
    N, C, L = x.shape
    T = L // KW
    xw = jnp.transpose(x[..., : T * KW].reshape(N, C, T, KW), (0, 2, 1, 3))
    code = jnp.einsum("ntck,ock->not", xw, w_enc) + b_enc[None, :, None]
    code = jnp.maximum(code, 0.0)                                     # (N, 16, T)
    out = jnp.einsum("not,ock->nctk", code, w_dec) + b_dec[None, :, None, None]
    out = jnp.maximum(out, 0.0).reshape(N, C, T * KW)
    return out, code


if __name__ == "__main__":
    key = jax.random.PRNGKey(0)
    k1, k2, k3, k4, k5 = jax.random.split(key, 5)

    # Deterministic synthetic parameters (shapes from nn.Conv1d / nn.ConvTranspose1d)
    fan_in_enc = C_IN * KW
    w_enc = jax.random.uniform(k2, (C_HID, C_IN, KW), jnp.float32,
                               -1.0 / fan_in_enc ** 0.5, 1.0 / fan_in_enc ** 0.5)
    b_enc = jax.random.uniform(k3, (C_HID,), jnp.float32,
                               -1.0 / fan_in_enc ** 0.5, 1.0 / fan_in_enc ** 0.5)
    fan_in_dec = C_HID * KW
    w_dec = jax.random.uniform(k4, (C_HID, C_IN, KW), jnp.float32,
                               -1.0 / fan_in_dec ** 0.5, 1.0 / fan_in_dec ** 0.5)
    b_dec = jax.random.uniform(k5, (C_IN,), jnp.float32,
                               -1.0 / fan_in_dec ** 0.5, 1.0 / fan_in_dec ** 0.5)

    # Case 1: batch=2, channels=2, length=4*45 (single t-tile path), f32 parity.
    N, L = 2, 4 * KW
    x = jax.random.normal(k1, (N, C_IN, L), dtype=jnp.float32)
    recon, code = autoencoder_forward(x, w_enc, b_enc, w_dec, b_dec)
    recon = jax.block_until_ready(recon)
    code = jax.block_until_ready(code)
    recon_ref, code_ref = _reference_forward(x, w_enc, b_enc, w_dec, b_dec)
    assert recon.shape == (N, C_IN, L) and code.shape == (N, C_HID, L // KW)
    assert jnp.allclose(recon, recon_ref, atol=1e-5, rtol=1e-5)
    assert jnp.allclose(code, code_ref, atol=1e-5, rtol=1e-5)

    # Case 2: batch=1, T=130 (multi t-tile + padded-tail + in-kernel transpose
    # path, grid = (1, 4) so v7x cores each get >=2 steps), f32 parity.
    N2, T2 = 1, 130
    x2 = jax.random.normal(k1, (N2, C_IN, T2 * KW), dtype=jnp.float32)
    recon2, code2 = autoencoder_forward(x2, w_enc, b_enc, w_dec, b_dec)
    recon2 = jax.block_until_ready(recon2)
    recon2_ref, code2_ref = _reference_forward(x2, w_enc, b_enc, w_dec, b_dec)
    assert recon2.shape == (N2, C_IN, T2 * KW) and code2.shape == (N2, C_HID, T2)
    assert jnp.allclose(recon2, recon2_ref, atol=1e-5, rtol=1e-5)
    assert jnp.allclose(code2, code2_ref, atol=1e-5, rtol=1e-5)

    # Case 3: bf16 I/O path (halves HBM traffic); looser tolerance per the
    # perf-review sign-off note.
    recon3, code3 = autoencoder_forward(x2, w_enc, b_enc, w_dec, b_dec,
                                        io_dtype=jnp.bfloat16)
    recon3 = jax.block_until_ready(recon3)
    assert jnp.allclose(recon3.astype(jnp.float32), recon2_ref, atol=5e-2, rtol=5e-2)
    assert jnp.allclose(code3.astype(jnp.float32), code2_ref, atol=5e-2, rtol=5e-2)

    print("KERNEL_OK")
</pallas_src>

<mosaic_0001>
module attributes {stable_mosaic.version = 11 : i64} {
  func.func @_ae_kernel(%arg0: i32, %arg1: i32, %arg2: memref<1x2x4x45xf32, #tpu.memory_space<vmem>>, %arg3: memref<2x45x16xf32, #tpu.memory_space<vmem>>, %arg4: memref<1x16xf32, #tpu.memory_space<vmem>>, %arg5: memref<2x16x45xf32, #tpu.memory_space<vmem>>, %arg6: memref<2x1x45xf32, #tpu.memory_space<vmem>>, %arg7: memref<1x2x4x45xf32, #tpu.memory_space<vmem>>, %arg8: memref<1x16x4xf32, #tpu.memory_space<vmem>>) attributes {dimension_semantics = [#tpu.dimension_semantics<parallel>, #tpu.dimension_semantics<parallel>], iteration_bounds = array<i64: 2, 1>, scalar_prefetch = 0 : i64, scratch_operands = 0 : i64, tpu.core_type = #tpu.core_type<tc>, window_params = [{transform_indices = @transform_0, window_bounds = array<i64: 1, 2, 4, 45>}, {pipeline_mode = #tpu.pipeline_mode<synchronous>, transform_indices = @transform_1, window_bounds = array<i64: 2, 45, 16>}, {pipeline_mode = #tpu.pipeline_mode<synchronous>, transform_indices = @transform_2, window_bounds = array<i64: 1, 16>}, {pipeline_mode = #tpu.pipeline_mode<synchronous>, transform_indices = @transform_3, window_bounds = array<i64: 2, 16, 45>}, {pipeline_mode = #tpu.pipeline_mode<synchronous>, transform_indices = @transform_4, window_bounds = array<i64: 2, 1, 45>}, {transform_indices = @transform_5, window_bounds = array<i64: 1, 2, 4, 45>}, {transform_indices = @transform_6, window_bounds = array<i64: 1, 16, 4>}]} {
    %c0 = arith.constant 0 : index
    %c0_0 = arith.constant 0 : index
    %c0_1 = arith.constant 0 : index
    %c0_2 = arith.constant 0 : index
    %0 = vector.load %arg2[%c0, %c0_0, %c0_1, %c0_2] : memref<1x2x4x45xf32, #tpu.memory_space<vmem>>, vector<1x1x4x45xf32>
    %1 = vector.shape_cast %0 : vector<1x1x4x45xf32> to vector<4x45xf32>
    %c0_3 = arith.constant 0 : index
    %c0_4 = arith.constant 0 : index
    %c0_5 = arith.constant 0 : index
    %2 = vector.load %arg3[%c0_3, %c0_4, %c0_5] : memref<2x45x16xf32, #tpu.memory_space<vmem>>, vector<1x45x16xf32>
    %3 = vector.shape_cast %2 : vector<1x45x16xf32> to vector<45x16xf32>
    %cst = arith.constant dense<0.000000e+00> : vector<4x16xf32>
    %4 = tpu.matmul %1, %3, %cst {dimension_numbers = #tpu.dot_dimension_numbers<[1], [0], [0], [1], [0, 0, 1, 1], [], []>} : vector<4x45xf32>, vector<45x16xf32>, vector<4x16xf32> -> vector<4x16xf32>
    %c0_6 = arith.constant 0 : index
    %c1 = arith.constant 1 : index
    %c0_7 = arith.constant 0 : index
    %c0_8 = arith.constant 0 : index
    %5 = vector.load %arg2[%c0_6, %c1, %c0_7, %c0_8] : memref<1x2x4x45xf32, #tpu.memory_space<vmem>>, vector<1x1x4x45xf32>
    %6 = vector.shape_cast %5 : vector<1x1x4x45xf32> to vector<4x45xf32>
    %c1_9 = arith.constant 1 : index
    %c0_10 = arith.constant 0 : index
    %c0_11 = arith.constant 0 : index
    %7 = vector.load %arg3[%c1_9, %c0_10, %c0_11] : memref<2x45x16xf32, #tpu.memory_space<vmem>>, vector<1x45x16xf32>
    %8 = vector.shape_cast %7 : vector<1x45x16xf32> to vector<45x16xf32>
    %cst_12 = arith.constant dense<0.000000e+00> : vector<4x16xf32>
    %9 = tpu.matmul %6, %8, %cst_12 {dimension_numbers = #tpu.dot_dimension_numbers<[1], [0], [0], [1], [0, 0, 1, 1], [], []>} : vector<4x45xf32>, vector<45x16xf32>, vector<4x16xf32> -> vector<4x16xf32>
    %10 = arith.addf %4, %9 : vector<4x16xf32>
    %c0_13 = arith.constant 0 : index
    %c0_14 = arith.constant 0 : index
    %11 = vector.load %arg4[%c0_13, %c0_14] : memref<1x16xf32, #tpu.memory_space<vmem>>, vector<1x16xf32>
    %12 = vector.broadcast %11 : vector<1x16xf32> to vector<4x16xf32>
    %13 = arith.addf %10, %12 : vector<4x16xf32>
    %cst_15 = arith.constant 0.000000e+00 : f32
    %14 = vector.broadcast %cst_15 : f32 to vector<4x16xf32>
    %15 = arith.maximumf %13, %14 : vector<4x16xf32>
    %16 = tpu.transpose %15, [1, 0] : vector<4x16xf32> -> vector<16x4xf32>
    %c0_16 = arith.constant 0 : index
    %c0_17 = arith.constant 0 : index
    %c0_18 = arith.constant 0 : index
    %17 = vector.load %arg8[%c0_16, %c0_17, %c0_18] : memref<1x16x4xf32, #tpu.memory_space<vmem>>, vector<1x16x4xf32>
    %18 = vector.shape_cast %17 : vector<1x16x4xf32> to vector<16x4xf32>
    %19 = vector.shape_cast %16 : vector<16x4xf32> to vector<1x16x4xf32>
    tpu.vector_store %arg8[%c0_16, %c0_17, %c0_18], %19 {strides = array<i32>} : memref<1x16x4xf32, #tpu.memory_space<vmem>>, vector<1x16x4xf32>,
    %c0_19 = arith.constant 0 : index
    %c0_20 = arith.constant 0 : index
    %c0_21 = arith.constant 0 : index
    %20 = vector.load %arg5[%c0_19, %c0_20, %c0_21] : memref<2x16x45xf32, #tpu.memory_space<vmem>>, vector<1x16x45xf32>
    %21 = vector.shape_cast %20 : vector<1x16x45xf32> to vector<16x45xf32>
    %cst_22 = arith.constant dense<0.000000e+00> : vector<4x45xf32>
    %22 = tpu.matmul %15, %21, %cst_22 {dimension_numbers = #tpu.dot_dimension_numbers<[1], [0], [0], [1], [0, 0, 1, 1], [], []>} : vector<4x16xf32>, vector<16x45xf32>, vector<4x45xf32> -> vector<4x45xf32>
    %c0_23 = arith.constant 0 : index
    %c0_24 = arith.constant 0 : index
    %c0_25 = arith.constant 0 : index
    %23 = vector.load %arg6[%c0_23, %c0_24, %c0_25] : memref<2x1x45xf32, #tpu.memory_space<vmem>>, vector<1x1x45xf32>
    %24 = vector.shape_cast %23 : vector<1x1x45xf32> to vector<1x45xf32>
    %25 = vector.broadcast %24 : vector<1x45xf32> to vector<4x45xf32>
    %26 = arith.addf %22, %25 : vector<4x45xf32>
    %c1_26 = arith.constant 1 : index
    %c0_27 = arith.constant 0 : index
    %c0_28 = arith.constant 0 : index
    %27 = vector.load %arg5[%c1_26, %c0_27, %c0_28] : memref<2x16x45xf32, #tpu.memory_space<vmem>>, vector<1x16x45xf32>
    %28 = vector.shape_cast %27 : vector<1x16x45xf32> to vector<16x45xf32>
    %cst_29 = arith.constant dense<0.000000e+00> : vector<4x45xf32>
    %29 = tpu.matmul %15, %28, %cst_29 {dimension_numbers = #tpu.dot_dimension_numbers<[1], [0], [0], [1], [0, 0, 1, 1], [], []>} : vector<4x16xf32>, vector<16x45xf32>, vector<4x45xf32> -> vector<4x45xf32>
    %c1_30 = arith.constant 1 : index
    %c0_31 = arith.constant 0 : index
    %c0_32 = arith.constant 0 : index
    %30 = vector.load %arg6[%c1_30, %c0_31, %c0_32] : memref<2x1x45xf32, #tpu.memory_space<vmem>>, vector<1x1x45xf32>
    %31 = vector.shape_cast %30 : vector<1x1x45xf32> to vector<1x45xf32>
    %32 = vector.broadcast %31 : vector<1x45xf32> to vector<4x45xf32>
    %33 = arith.addf %29, %32 : vector<4x45xf32>
    %cst_33 = arith.constant 0.000000e+00 : f32
    %34 = vector.broadcast %cst_33 : f32 to vector<4x45xf32>
    %35 = arith.maximumf %26, %34 : vector<4x45xf32>
    %c0_34 = arith.constant 0 : index
    %c0_35 = arith.constant 0 : index
    %c0_36 = arith.constant 0 : index
    %c0_37 = arith.constant 0 : index
    %36 = vector.load %arg7[%c0_34, %c0_35, %c0_36, %c0_37] : memref<1x2x4x45xf32, #tpu.memory_space<vmem>>, vector<1x1x4x45xf32>
    %37 = vector.shape_cast %36 : vector<1x1x4x45xf32> to vector<4x45xf32>
    %38 = vector.shape_cast %35 : vector<4x45xf32> to vector<1x1x4x45xf32>
    tpu.vector_store %arg7[%c0_34, %c0_35, %c0_36, %c0_37], %38 {strides = array<i32>} : memref<1x2x4x45xf32, #tpu.memory_space<vmem>>, vector<1x1x4x45xf32>,
    %cst_38 = arith.constant 0.000000e+00 : f32
    %39 = vector.broadcast %cst_38 : f32 to vector<4x45xf32>
    %40 = arith.maximumf %33, %39 : vector<4x45xf32>
    %c0_39 = arith.constant 0 : index
    %c1_40 = arith.constant 1 : index
    %c0_41 = arith.constant 0 : index
    %c0_42 = arith.constant 0 : index
    %41 = vector.load %arg7[%c0_39, %c1_40, %c0_41, %c0_42] : memref<1x2x4x45xf32, #tpu.memory_space<vmem>>, vector<1x1x4x45xf32>
    %42 = vector.shape_cast %41 : vector<1x1x4x45xf32> to vector<4x45xf32>
    %43 = vector.shape_cast %40 : vector<4x45xf32> to vector<1x1x4x45xf32>
    tpu.vector_store %arg7[%c0_39, %c1_40, %c0_41, %c0_42], %43 {strides = array<i32>} : memref<1x2x4x45xf32, #tpu.memory_space<vmem>>, vector<1x1x4x45xf32>,
    return
  }
  func.func @transform_0(%arg0: i32, %arg1: i32) -> (i32, i32, i32, i32) {
    %c0_i32 = arith.constant 0 : i32
    %c0_i32_0 = arith.constant 0 : i32
    %c0_i32_1 = arith.constant 0 : i32
    return %arg0, %c0_i32, %arg1, %c0_i32_0 : i32, i32, i32, i32
  }
  func.func @transform_1(%arg0: i32, %arg1: i32) -> (i32, i32, i32) {
    %c0_i32 = arith.constant 0 : i32
    %c0_i32_0 = arith.constant 0 : i32
    %c0_i32_1 = arith.constant 0 : i32
    %c0_i32_2 = arith.constant 0 : i32
    return %c0_i32, %c0_i32_0, %c0_i32_1 : i32, i32, i32
  }
  func.func @transform_2(%arg0: i32, %arg1: i32) -> (i32, i32) {
    %c0_i32 = arith.constant 0 : i32
    %c0_i32_0 = arith.constant 0 : i32
    %c0_i32_1 = arith.constant 0 : i32
    return %c0_i32, %c0_i32_0 : i32, i32
  }
  func.func @transform_3(%arg0: i32, %arg1: i32) -> (i32, i32, i32) {
    %c0_i32 = arith.constant 0 : i32
    %c0_i32_0 = arith.constant 0 : i32
    %c0_i32_1 = arith.constant 0 : i32
    %c0_i32_2 = arith.constant 0 : i32
    return %c0_i32, %c0_i32_0, %c0_i32_1 : i32, i32, i32
  }
  func.func @transform_4(%arg0: i32, %arg1: i32) -> (i32, i32, i32) {
    %c0_i32 = arith.constant 0 : i32
    %c0_i32_0 = arith.constant 0 : i32
    %c0_i32_1 = arith.constant 0 : i32
    %c0_i32_2 = arith.constant 0 : i32
    return %c0_i32, %c0_i32_0, %c0_i32_1 : i32, i32, i32
  }
  func.func @transform_5(%arg0: i32, %arg1: i32) -> (i32, i32, i32, i32) {
    %c0_i32 = arith.constant 0 : i32
    %c0_i32_0 = arith.constant 0 : i32
    %c0_i32_1 = arith.constant 0 : i32
    return %arg0, %c0_i32, %arg1, %c0_i32_0 : i32, i32, i32, i32
  }
  func.func @transform_6(%arg0: i32, %arg1: i32) -> (i32, i32, i32) {
    %c0_i32 = arith.constant 0 : i32
    %c0_i32_0 = arith.constant 0 : i32
    return %arg0, %c0_i32, %arg1 : i32, i32, i32
  }
}

</mosaic_0001>

<bundles_post_ra>
// kernel: autoencoder_forward.1
= control target key start
LH: loop header
LB: loop body
LE: loop exit
PB: predicated region body
PF: predicated region fallthrough
CT: control target
= control target key end

     0   :  { %s729_s21 = smov 0   ;;  %s731_s22 = smov 0   ;;  %s830_s0 = inlined_call_operand.vmem [shape: f32[2,2,4,45], index: 0, kind: input, shape index: {}]   ;;  %s831_s1 = inlined_call_operand.vmem [shape: f32[2,45,16], index: 1, kind: input, shape index: {}]   ;;  %s832_s2 = inlined_call_operand.vmem [shape: f32[1,16], index: 2, kind: input, shape index: {}]   ;;  %s833_s3 = inlined_call_operand.vmem [shape: f32[2,16,45], index: 3, kind: input, shape index: {}]   ;;  %s834_s4 = inlined_call_operand.vmem [shape: f32[2,1,45], index: 4, kind: input, shape index: {}]   ;;  %s835_s5 = inlined_call_operand.vmem [shape: f32[2,2,4,45], index: 5, kind: output, shape index: {0}]   ;;  %s836_s6 = inlined_call_operand.vmem [shape: f32[2,16,4], index: 6, kind: output, shape index: {1}]  }
   0x1   :  { %s733_s23 = smov 0  }
   0x2 LB: > { %s29_s24 = sadd.s32 1, %s688_s22  ;;  %p613_p0 = scmp.ge.s32.totalorder %s692_s23, 1  ;;  %s692_s23 = sphi %s733_s23, %s17_s23   ;;  %s688_s22 = sphi %s731_s22, %s838_s22   ;;  %s684_s21 = sphi %s729_s21, %s837_s21  }
   0x3   : > { %p31_p1 = scmp.ge.s32.totalorder %s29_s24, 2  ;;  %p236_p2 = scmp.lt.s32.totalorder %s692_s23, 3 }
   0x5   : > { %s840_s24 = smov (%p31_p1, %s29_s24), 0  ;;  %p237_p3 = pnand %p613_p0, %p236_p2 }
   0x6   : > { %p280_p4 = scmp.lt.s32.totalorder (!%p237_p3), %s684_s21, 1 }
   0x7   : > { %240 = sbr.rel (%p237_p3) target bundleno = 330 (0x14a), region = 40 }
   0xc   : > { %v626_v0 = vld [vmem:[%s831_s1 + $0x58] sm:$0x1f]  ;;  %vm324_vm0 = vcmask 1044480   ;;  %v310_v1 = vld [vmem:[%s831_s1 + $0x28] sm:$0x1f]  ;;  %v625_v2 = vld [vmem:[%s831_s1 + $0x50] sm:$0xff] }
   0xd   : > { %627 = vmatpush.msk.msra.mxu0 %vm324_vm0, %v626_v0  ;;  %629 = vmatpush.msk.msra.mxu1 %vm324_vm0, %v310_v1  ;;  %v309_v3 = vld [vmem:[%s831_s1 + $0x20] sm:$0xff]  ;;  %v624_v4 = vld [vmem:[%s831_s1 + $0x48] sm:$0xff]  ;;  %v308_v5 = vld [vmem:[%s831_s1 + $0x18] sm:$0xff]  ;;  %s842_s21 = smov (!%p280_p4, %s684_s21), 1  ;;  %vm320_vm1 = vcmask 367616   ;;  %vm421_vm2 = vcmask 130048  }
   0xe   : > { %v623_v6 = vld [vmem:[%s831_s1 + $0x40] sm:$0xff]  ;;  %v307_v7 = vld [vmem:[%s831_s1 + $0x10] sm:$0xff]  ;;  %s639_s17 = sshll.u32 %s842_s21, 3  ;;  %v622_v8 = vld [vmem:[%s831_s1 + $0x38] sm:$0xff]  ;;  %vm474_vm3 = vcmask 363520   ;;  %s641_s7 = sshll.u32 %s842_s21, 4 }
   0xf   : > { %339 = vmatpush.msra.mxu0 %v625_v2  ;;  %365 = vmatpush.msra.mxu1 %v309_v3  ;;  %v306_v9 = vld [vmem:[%s831_s1 + $0x8] sm:$0xff]  ;;  %s287_s28 = scalar_lea.vmem %s830_s0, %s639_s17  ;;  %v621_v10 = vld [vmem:[%s831_s1 + $0x30] sm:$0xff]  ;;  %v305_v11 = vld [vmem:[%s831_s1] sm:$0xff]  ;;  %s295_s30 = scalar_lea.vmem %s835_s5, %s639_s17  ;;  %vm412_vm4 = vcmask 31744  }
  0x10   : > { %v620_v12 = vld [vmem:[%s287_s28 + $0x4] sm:$0xf]  ;;  %v304_v13 = vld [vmem:[%s287_s28] sm:$0xf]  ;;  %v416_v14 = vld [vmem:[%s833_s3 + $0x8] sm:$0xff]  ;;  %s303_s10 = scalar_lea.vmem %s836_s6, %s641_s7 }
  0x11   : > { %340 = vmatpush.msra.mxu0 %v624_v4  ;;  %366 = vmatpush.msra.mxu1 %v308_v5  ;;  %v633_v15 = vld [vmem:[%s833_s3 + $0x18] sm:$0xff]  ;;  %v415_v16 = vld [vmem:[%s833_s3] sm:$0xff]  ;;  %v632_v17 = vld [vmem:[%s833_s3 + $0x10] sm:$0xff] }
  0x12   : > { %439 = vmatpush.msra.mxu2 %v416_v14  ;;  %467 = vmatpush.msra.mxu3 %v633_v15  ;;  %v667_v18 = vld [vmem:[%s832_s2] ss:$0 sm:$0xff]  ;;  %v669_v25 = vld [vmem:[%s834_s4 + $0x1] ss:$0 sm:$0xff] }
  0x13   : > { %341 = vmatpush.msra.mxu0 %v623_v6  ;;  %367 = vmatpush.msra.mxu1 %v307_v7  ;;  %v668_v24 = vld [vmem:[%s834_s4] ss:$0 sm:$0xff] }
  0x14   : > { %440 = vmatpush.msra.mxu2 %v415_v16  ;;  %468 = vmatpush.msra.mxu3 %v632_v17 }
  0x15   : > { %342 = vmatpush.msra.mxu0 %v622_v8  ;;  %368 = vmatpush.msra.mxu1 %v306_v9 }
  0x17   : > { %343 = vmatpush.msra.mxu0 %v621_v10  ;;  %369 = vmatpush.msra.mxu1 %v305_v11 }
  0x18   : > { %628 = vmatmul.msk.f32.vlgmr.msra.gmra.mxu0 %vm320_vm1, %v620_v12  ;;  %630 = vmatmul.msk.f32.vlgmr.msra.gmra.mxu1 %vm320_vm1, %v304_v13 }
  0x95   : > { %v345_v19 = vpop.f32.mrf.mxu0  ;;  %v371_v20 = vpop.f32.mrf.mxu1 }
  0x96   : > { %v372_v21 = vadd.f32 %v371_v20, %v345_v19 }
  0x98   : > { %v378_v22 = vadd.f32 %v667_v18, %v372_v21 }
  0x9a   : > { %v379_v23 = vmax.f32 %v378_v22, 0.0 }
  0x9c   : > { %380 = vxpose.xlu0.b32.start.end [1/1] (short) (narrow) %v379_v23, 16  ;;  %631 = vmatmul.msk.f32.vlgmr.msra.gmra.mxu2 %vm421_vm2, %v379_v23 }
  0x9d   : > { %635 = vmatmul.msk.f32.vlgmr.msra.gmra.mxu3 %vm421_vm2, %v379_v23 }
 0x11f   : > { %v442_v26 = vpop.f32.mrf.mxu2 }
 0x120   : > { %v443_v27 = vadd.f32 %v668_v24, %v442_v26  ;;  %v470_v28 = vpop.f32.mrf.mxu3 }
 0x121   : > { %v471_v29 = vadd.f32 %v669_v25, %v470_v28 }
 0x122   : > { %v473_v30 = vmax.f32 %v443_v27, 0.0 }
 0x123   : > { %v476_v31 = vmax.f32 %v471_v29, 0.0 }
 0x124   : > { %475 = vst.msk [vmem:[%s295_s30] sm:$0xf] %vm474_vm3, %v473_v30 }
 0x125   : > { %636 = vst.msk [vmem:[%s295_s30 + $0x4] sm:$0xf] %vm474_vm3, %v476_v31 }
 0x140   : > { %v396_v32 = vpop.trf.xlu0 }
 0x141   : > { %413 = vst.msk [vmem:[%s303_s10] sm:$0xff] %vm412_vm4, %v396_v32 }
 0x148   : > { %v397_v33 = vpop.trf.xlu0 }
 0x149   : > { %414 = vst.msk [vmem:[%s303_s10 + $0x8] sm:$0xff] %vm412_vm4, %v397_v33 }
 0x14a PF: > { %s17_s23 = sadd.s32 1, %s692_s23   ;;  %s837_s21 = smov %s688_s22 }
 0x14b   : > { %p14_p5 = scmp.ge.s32.totalorder %s17_s23, 4   ;;  %s838_s22 = smov %s840_s24 }
 0x14d   :  { %16 = sbr.rel (!%p14_p5) target bundleno = 2 (0x2), region = 87 }

</bundles_post_ra>
